<compile_context>
chip_gen: v6e
topology: v6e:2x2x1
jax: 0.10.0
libtpu: 0.0.40
codegen_flags: <defaults>
</compile_context>

<pallas_src>
import jax
import jax.numpy as jnp
from jax.experimental import pallas as pl
from jax.experimental.pallas import tpu as pltpu


# ----------------------------- tiling heuristics -----------------------------
_SHARED_BLOCK_ELEMS = 512 * 1024      # ~2 MiB f32 per x block (table-kernel path)
_POS_BLOCK_ELEMS = 256 * 1024         # ~1 MiB; the trig kernel holds more f32 temps
_VMEM_LIMIT_BYTES = 48 * 1024 * 1024  # < v7x's 64 MiB physical VMEM per TensorCore


def _sublane_unit(dtype) -> int:
    """Minimum dense sublane tile for dtype: 8 (f32) / 16 (bf16) / 32 (int8/fp8)."""
    return 8 * max(1, 4 // jnp.dtype(dtype).itemsize)


def _choose_tiles(n_rows: int, n_cols: int, unit: int, target_elems: int):
    """Pick a (rows, cols) block.

    Invariants (TPU (8,128) block-shape rule):
      * row tile is a multiple of `unit` or exactly n_rows,
      * col tile is a multiple of 128 or exactly n_cols,
      * block element count <= target_elems (so double-buffered in/out blocks plus
        f32 in-kernel temporaries fit the VMEM budget on v5e/v6e/v7x).
    """
    tb = n_rows if n_rows <= unit else unit
    if tb * n_cols <= target_elems:
        tc = n_cols                                   # full rows
        tb_budget = max(1, target_elems // n_cols)    # grow the row tile to the budget
        if tb_budget >= n_rows:
            tb = n_rows
        elif n_rows > unit:
            tb = max(unit, (tb_budget // unit) * unit)
    else:
        tc = max(128, ((target_elems // tb) // 128) * 128)
        tc = min(tc, n_cols)
    return tb, tc


# --------------------------------- kernels -----------------------------------
def _pair_swap(x):
    """Exchange adjacent even/odd lanes: out[2i] = x[2i+1], out[2i+1] = x[2i].

    Two static XLU rolls + a parity select; the roll wrap-around values are never
    selected because the lane width is always even (pairs never straddle a block).
    """
    tc = x.shape[-1]
    nxt = pltpu.roll(x, shift=tc - 1, axis=1)      # nxt[j] = x[j + 1]
    prv = pltpu.roll(x, shift=1, axis=1)           # prv[j] = x[j - 1]
    lane = jax.lax.broadcasted_iota(jnp.int32, x.shape, 1)
    return jnp.where(lane % 2 == 0, nxt, prv)


def _rope_table_kernel(x_ref, cos_ref, sin_ref, o_ref):
    """y = cos_e * x + sin_alt * swap(x) with precomputed expanded tables.

    cos_ref: interleave-expanded cos  [c0, c0, c1, c1, ...]
    sin_ref: sign-baked expanded sin  [-s0, +s0, -s1, +s1, ...]
    Tables may be (1, tc) (shared positions, VMEM-resident) or (tb, tc) per-row,
    and may be bf16 (upcast here); the rotation math is always f32.
    """
    x = x_ref[...].astype(jnp.float32)
    c = cos_ref[...].astype(jnp.float32)
    s = sin_ref[...].astype(jnp.float32)
    o_ref[...] = (c * x + s * _pair_swap(x)).astype(o_ref.dtype)


def _rope_positions_kernel(pos_ref, x_ref, invf_ref, o_ref):
    """Same rotation, but cos/sin are computed in-kernel from per-token positions.

    x_ref   : (tr, d_k) token rows (interleaved layout)
    pos_ref : (tr, 1)   f32 token positions
    invf_ref: (1, d_k)  f32 sign-baked expanded inverse frequencies
                        [-f0, +f0, -f1, +f1, ...]  (resident across the grid)
    cos(pos*invf_signed) = expanded cos (cos is even); sin(pos*invf_signed) = sign-
    baked expanded sin, so no extra sign multiply is needed.  The EUP slot is idle in
    this memory-bound kernel, so the transcendentals are effectively free and the
    only HBM traffic is x in + y out (+ ~4/d_k B/elem of positions).
    """
    x = x_ref[...].astype(jnp.float32)
    ang = pos_ref[...] * invf_ref[...]             # (tr,1)*(1,d_k) -> (tr,d_k)
    o_ref[...] = (jnp.cos(ang) * x + jnp.sin(ang) * _pair_swap(x)).astype(o_ref.dtype)


# ------------------------------ pallas wrappers -------------------------------
def _rope_pallas(x2d, cos2d, sin2d, *, target_elems=_SHARED_BLOCK_ELEMS):
    """x2d: (R, C); cos2d/sin2d: (R, C) per-row or (1, C) shared. Returns (R, C)."""
    R, C = x2d.shape
    shared = cos2d.shape[0] == 1
    unit = _sublane_unit(x2d.dtype)
    if not shared:
        unit = max(unit, _sublane_unit(cos2d.dtype))
    tb, tc = _choose_tiles(R, C, unit, target_elems)
    n_row, n_col = pl.cdiv(R, tb), pl.cdiv(C, tc)

    if n_col == 1:
        grid = (n_row,)
        x_spec = pl.BlockSpec((tb, tc), lambda i: (i, 0))
        t_spec = pl.BlockSpec((1, tc), lambda i: (0, 0)) if shared else x_spec
        dims = ("parallel",)
    else:
        # Row axis innermost: a shared (1, tc) table block keeps the same block index
        # across the inner row loop, so it is DMA'd once per column block and stays
        # VMEM-resident instead of being re-fetched every grid step.
        grid = (n_col, n_row)
        x_spec = pl.BlockSpec((tb, tc), lambda j, i: (i, j))
        t_spec = pl.BlockSpec((1, tc), lambda j, i: (0, j)) if shared else x_spec
        dims = ("parallel", "parallel")

    return pl.pallas_call(
        _rope_table_kernel,
        out_shape=jax.ShapeDtypeStruct((R, C), x2d.dtype),
        grid_spec=pltpu.PrefetchScalarGridSpec(
            num_scalar_prefetch=0,
            grid=grid,
            in_specs=[x_spec, t_spec, t_spec],
            out_specs=x_spec,
        ),
        compiler_params=pltpu.CompilerParams(
            dimension_semantics=dims,
            vmem_limit_bytes=_VMEM_LIMIT_BYTES,
        ),
    )(x2d, cos2d, sin2d)


def _rope_positions_pallas(x_tok, pos_tok, invf_row, *, target_elems=_POS_BLOCK_ELEMS):
    """x_tok: (N, d_k); pos_tok: (N, 1) f32; invf_row: (1, d_k) f32 sign-baked."""
    N, Dk = x_tok.shape
    unit = _sublane_unit(x_tok.dtype)
    tr = max(1, target_elems // Dk)
    if tr >= N or N <= unit:
        tr = N                                    # full dim -> always a legal block
    else:
        tr = max(unit, (tr // unit) * unit)       # multiple of the sublane unit

    grid = (pl.cdiv(N, tr),)
    x_spec = pl.BlockSpec((tr, Dk), lambda i: (i, 0))
    p_spec = pl.BlockSpec((tr, 1), lambda i: (i, 0))
    f_spec = pl.BlockSpec((1, Dk), lambda i: (0, 0))   # resident across the whole grid

    return pl.pallas_call(
        _rope_positions_kernel,
        out_shape=jax.ShapeDtypeStruct((N, Dk), x_tok.dtype),
        grid_spec=pltpu.PrefetchScalarGridSpec(
            num_scalar_prefetch=0,
            grid=grid,
            in_specs=[p_spec, x_spec, f_spec],
            out_specs=x_spec,
        ),
        compiler_params=pltpu.CompilerParams(
            dimension_semantics=("parallel",),
            vmem_limit_bytes=_VMEM_LIMIT_BYTES,
        ),
    )(pos_tok, x_tok, invf_row)


# -------------------------------- Rope module ---------------------------------
class Rope:
    """JAX/Pallas port of the PyTorch Rope module (forward pass)."""

    def __init__(self, theta: float, d_k: int, max_seq_len: int):
        assert d_k % 2 == 0
        self.d_k = d_k
        self.max_seq_len = max_seq_len

        inv_freqs = 1.0 / theta ** (jnp.arange(0, d_k, 2, dtype=jnp.float32) / d_k)
        pos = jnp.arange(max_seq_len, dtype=jnp.float32)
        freqs = jnp.einsum("i,j->ij", pos, inv_freqs)        # (L, d_k//2)
        self.cos = jnp.cos(freqs)                             # same as the torch buffers
        self.sin = jnp.sin(freqs)

        # Interleave-expanded tables (f32, used by the shared-position fast path):
        #   cos_e[p, 2i] = cos_e[p, 2i+1] = cos[p, i]
        #   sin_alt[p, 2i] = -sin[p, i] ; sin_alt[p, 2i+1] = +sin[p, i]
        sign = jnp.tile(jnp.array([-1.0, 1.0], dtype=jnp.float32), d_k // 2)
        self._cos_e = jnp.repeat(self.cos, 2, axis=-1)        # (L, d_k) f32
        self._sin_alt = jnp.repeat(self.sin, 2, axis=-1) * sign
        # bf16 copies for the gather fallback path (halves table HBM traffic).
        self._cos_e_bf16 = self._cos_e.astype(jnp.bfloat16)
        self._sin_alt_bf16 = self._sin_alt.astype(jnp.bfloat16)

        # Sign-baked expanded inverse frequencies for the in-kernel trig path:
        #   invf_signed[2i] = -inv_freqs[i] ; invf_signed[2i+1] = +inv_freqs[i]
        # cos(pos*invf_signed) == cos_e row, sin(pos*invf_signed) == sin_alt row.
        self._invf_signed_row = (jnp.repeat(inv_freqs, 2) * sign).reshape(1, d_k)

        # Prefer computing cos/sin on the EUP inside the kernel (zero table traffic);
        # flip to the bf16-table gather path if that kernel ever fails to lower.
        self._use_in_kernel_trig = True

    # ---- general per-batch-position paths ----
    def _forward_general_compute(self, x, tp):
        *lead, S, Dk = x.shape
        B = 1
        for d in lead:
            B *= d
        pos_tok = (jnp.broadcast_to(tp, (*lead, S))
                   .reshape(B * S, 1).astype(jnp.float32))
        x_tok = x.reshape(B * S, Dk)
        out = _rope_positions_pallas(x_tok, pos_tok, self._invf_signed_row)
        return out.reshape(x.shape)

    def _forward_general_gather(self, x, tp):
        # Fallback: XLA-gathered bf16 expanded tables (upcast to f32 in the kernel).
        *lead, S, Dk = x.shape
        B = 1
        for d in lead:
            B *= d
        C = S * Dk
        posi = jnp.broadcast_to(tp, (*lead, S)).reshape(B, S)
        cos2d = self._cos_e_bf16[posi].reshape(B, C)
        sin2d = self._sin_alt_bf16[posi].reshape(B, C)
        out2d = _rope_pallas(x.reshape(B, C), cos2d, sin2d)
        return out2d.reshape(x.shape)

    def __call__(self, x: jax.Array, token_positions=None) -> jax.Array:
        """
        x:               (..., seq_len, d_k)  -- must be contiguous in (seq_len, d_k)
        token_positions: (..., seq_len) int, or None (-> arange(seq_len))
        returns:         (..., seq_len, d_k), same dtype as x
        """
        *lead, S, Dk = x.shape
        assert Dk == self.d_k
        B = 1
        for d in lead:
            B *= d

        # Shared-position fast path: positions identical for every batch row.
        tp = None
        pos1d = None
        if token_positions is None:
            pos1d = jnp.arange(S, dtype=jnp.int32)
        else:
            tp = jnp.asarray(token_positions)
            if tp.ndim <= 1 or all(d == 1 for d in tp.shape[:-1]):
                pos1d = tp.reshape(S).astype(jnp.int32)

        if pos1d is not None:
            # Lane-dense (B, S*d_k) view; one (1, S*d_k) f32 table row per table,
            # resident in VMEM across the row grid.
            C = S * Dk
            cos_row = self._cos_e[pos1d].reshape(1, C)
            sin_row = self._sin_alt[pos1d].reshape(1, C)
            out2d = _rope_pallas(x.reshape(B, C), cos_row, sin_row)
            return out2d.reshape(x.shape)

        # General per-batch positions.
        if self._use_in_kernel_trig:
            try:
                return self._forward_general_compute(x, tp)
            except Exception:
                # In-kernel sin/cos failed to lower on this backend/version; fall back
                # to gathered bf16 tables for all subsequent calls.
                self._use_in_kernel_trig = False
        return self._forward_general_gather(x, tp)


# ---------------------------------- reference ----------------------------------
def _rope_ref(cos, sin, x, token_positions):
    x0 = x[..., 0::2]
    x1 = x[..., 1::2]
    if token_positions is None:
        token_positions = jnp.arange(x.shape[-2], dtype=jnp.int32)
    c = cos[token_positions]
    s = sin[token_positions]
    y0 = c * x0 - s * x1
    y1 = s * x0 + c * x1
    return jnp.stack([y0, y1], axis=-1).reshape(x.shape)


if __name__ == "__main__":
    theta = 10000.0
    d_k = 32
    max_seq_len = 16
    batch = 2
    seq = 8

    rope = Rope(theta, d_k, max_seq_len)

    key = jax.random.PRNGKey(0)
    kx, kp = jax.random.split(key)
    x = jax.random.normal(kx, (batch, seq, d_k), dtype=jnp.float32)
    token_positions = jax.random.randint(kp, (batch, seq), 0, max_seq_len, dtype=jnp.int32)

    # 1) General per-batch positions (in-kernel angle/cos/sin path, or gather fallback).
    out = jax.block_until_ready(rope(x, token_positions))
    ref = _rope_ref(rope.cos, rope.sin, x, token_positions)
    assert out.shape == x.shape and out.dtype == x.dtype
    tol = 5e-3 if rope._use_in_kernel_trig else 3e-2
    assert jnp.allclose(out, ref, atol=tol, rtol=tol), float(jnp.max(jnp.abs(out - ref)))

    # 2) Explicit gather-fallback path (bf16 tables), exercised regardless of (1).
    out_fb = jax.block_until_ready(
        rope._forward_general_gather(x, jnp.asarray(token_positions)))
    assert jnp.allclose(out_fb, ref, atol=3e-2, rtol=3e-2)

    # 3) Shared-position fast path (None -> arange; table row resident in VMEM).
    out_none = jax.block_until_ready(rope(x, None))
    ref_none = _rope_ref(rope.cos, rope.sin, x, None)
    assert jnp.allclose(out_none, ref_none, atol=1e-5, rtol=1e-5)

    # 4) Shared positions given as an explicit 1-D tensor.
    pos1 = jnp.arange(seq, dtype=jnp.int32)[::-1]
    out_1d = jax.block_until_ready(rope(x, pos1))
    ref_1d = _rope_ref(rope.cos, rope.sin, x, pos1)
    assert jnp.allclose(out_1d, ref_1d, atol=1e-5, rtol=1e-5)

    # 5) bf16 input through the general path (f32 math in-kernel, bf16 output).
    xb = x.astype(jnp.bfloat16)
    out_bf = jax.block_until_ready(rope(xb, token_positions))
    ref_bf = _rope_ref(rope.cos, rope.sin, xb.astype(jnp.float32), token_positions)
    assert out_bf.dtype == jnp.bfloat16
    assert jnp.allclose(out_bf.astype(jnp.float32), ref_bf, atol=3e-2, rtol=3e-2)

    # 6) Partial blocks in both grid dims (non-divisible rows/cols, tiny block target):
    #    rows 10 -> 8 + 2, cols 7*32=224 -> 128 + 96; pairs never straddle a boundary.
    Bp, Sp = 10, 7
    xp = jax.random.normal(jax.random.PRNGKey(1), (Bp, Sp, d_k), dtype=jnp.float32)
    posp = jnp.arange(Sp, dtype=jnp.int32)
    cos_row = rope._cos_e[posp].reshape(1, Sp * d_k)
    sin_row = rope._sin_alt[posp].reshape(1, Sp * d_k)
    outp = jax.block_until_ready(
        _rope_pallas(xp.reshape(Bp, Sp * d_k), cos_row, sin_row, target_elems=1024))
    refp = _rope_ref(rope.cos, rope.sin, xp, None).reshape(Bp, Sp * d_k)
    assert jnp.allclose(outp, refp, atol=1e-5, rtol=1e-5)

    print("KERNEL_OK")
</pallas_src>

<mosaic_0001>
module attributes {stable_mosaic.version = 11 : i64} {
  func.func @_rope_positions_kernel(%arg0: i32, %arg1: memref<16x1xf32, #tpu.memory_space<vmem>>, %arg2: memref<16x32xf32, #tpu.memory_space<vmem>>, %arg3: memref<1x32xf32, #tpu.memory_space<vmem>>, %arg4: memref<16x32xf32, #tpu.memory_space<vmem>>) attributes {dimension_semantics = [#tpu.dimension_semantics<parallel>], iteration_bounds = array<i64: 1>, scalar_prefetch = 0 : i64, scratch_operands = 0 : i64, tpu.core_type = #tpu.core_type<tc>, window_params = [{transform_indices = @transform_0, window_bounds = array<i64: 16, 1>}, {transform_indices = @transform_1, window_bounds = array<i64: 16, 32>}, {pipeline_mode = #tpu.pipeline_mode<synchronous>, transform_indices = @transform_2, window_bounds = array<i64: 1, 32>}, {transform_indices = @transform_3, window_bounds = array<i64: 16, 32>}]} {
    %c0 = arith.constant 0 : index
    %c0_0 = arith.constant 0 : index
    %0 = vector.load %arg2[%c0, %c0_0] : memref<16x32xf32, #tpu.memory_space<vmem>>, vector<16x32xf32>
    %c0_1 = arith.constant 0 : index
    %c0_2 = arith.constant 0 : index
    %1 = vector.load %arg1[%c0_1, %c0_2] : memref<16x1xf32, #tpu.memory_space<vmem>>, vector<16x1xf32>
    %c0_3 = arith.constant 0 : index
    %c0_4 = arith.constant 0 : index
    %2 = vector.load %arg3[%c0_3, %c0_4] : memref<1x32xf32, #tpu.memory_space<vmem>>, vector<1x32xf32>
    %3 = vector.broadcast %1 : vector<16x1xf32> to vector<16x32xf32>
    %4 = vector.broadcast %2 : vector<1x32xf32> to vector<16x32xf32>
    %5 = arith.mulf %3, %4 : vector<16x32xf32>
    %6 = math.cos %5 : vector<16x32xf32>
    %7 = arith.mulf %6, %0 : vector<16x32xf32>
    %8 = math.sin %5 : vector<16x32xf32>
    %c31_i32 = arith.constant 31 : i32
    %9 = tpu.dynamic_rotate %0 by %c31_i32 dim 1 : vector<16x32xf32>, i32 -> vector<16x32xf32>
    %c1_i32 = arith.constant 1 : i32
    %10 = tpu.dynamic_rotate %0 by %c1_i32 dim 1 : vector<16x32xf32>, i32 -> vector<16x32xf32>
    %11 = tpu.iota {dimensions = array<i32: 1>} : vector<16x32xi32>
    %c2_i32 = arith.constant 2 : i32
    %c0_i32 = arith.constant 0 : i32
    %12 = arith.cmpi eq, %c2_i32, %c0_i32 : i32
    %c1_i32_5 = arith.constant 1 : i32
    %13 = arith.select %12, %c1_i32_5, %c2_i32 : i32
    %14 = vector.broadcast %13 : i32 to vector<16x32xi32>
    %15 = arith.remsi %11, %14 : vector<16x32xi32>
    %c0_i32_6 = arith.constant 0 : i32
    %16 = vector.broadcast %c0_i32_6 : i32 to vector<16x32xi32>
    %17 = arith.cmpi ne, %15, %16 : vector<16x32xi32>
    %c0_i32_7 = arith.constant 0 : i32
    %18 = vector.broadcast %c0_i32_7 : i32 to vector<16x32xi32>
    %19 = arith.cmpi slt, %15, %18 : vector<16x32xi32>
    %c0_i32_8 = arith.constant 0 : i32
    %20 = arith.cmpi slt, %13, %c0_i32_8 : i32
    %21 = vector.broadcast %20 : i1 to vector<16x32xi1>
    %22 = vector.broadcast %21 : vector<16x32xi1> to vector<16x32xi1>
    %23 = arith.xori %19, %22 : vector<16x32xi1>
    %24 = arith.andi %23, %17 : vector<16x32xi1>
    %25 = vector.broadcast %13 : i32 to vector<16x32xi32>
    %26 = arith.addi %15, %25 : vector<16x32xi32>
    %27 = arith.select %24, %26, %15 : vector<16x32xi1>, vector<16x32xi32>
    %c0_i32_9 = arith.constant 0 : i32
    %28 = vector.broadcast %c0_i32_9 : i32 to vector<16x32xi32>
    %29 = arith.cmpi eq, %27, %28 : vector<16x32xi32>
    %30 = arith.select %29, %9, %10 : vector<16x32xi1>, vector<16x32xf32>
    %31 = arith.mulf %8, %30 : vector<16x32xf32>
    %32 = arith.addf %7, %31 : vector<16x32xf32>
    %c0_10 = arith.constant 0 : index
    %c0_11 = arith.constant 0 : index
    %33 = vector.load %arg4[%c0_10, %c0_11] : memref<16x32xf32, #tpu.memory_space<vmem>>, vector<16x32xf32>
    tpu.vector_store %arg4[%c0_10, %c0_11], %32 {strides = array<i32>} : memref<16x32xf32, #tpu.memory_space<vmem>>, vector<16x32xf32>,
    return
  }
  func.func @transform_0(%arg0: i32) -> (i32, i32) {
    %c0_i32 = arith.constant 0 : i32
    %c0_i32_0 = arith.constant 0 : i32
    return %arg0, %c0_i32 : i32, i32
  }
  func.func @transform_1(%arg0: i32) -> (i32, i32) {
    %c0_i32 = arith.constant 0 : i32
    %c0_i32_0 = arith.constant 0 : i32
    return %arg0, %c0_i32 : i32, i32
  }
  func.func @transform_2(%arg0: i32) -> (i32, i32) {
    %c0_i32 = arith.constant 0 : i32
    %c0_i32_0 = arith.constant 0 : i32
    %c0_i32_1 = arith.constant 0 : i32
    return %c0_i32, %c0_i32_0 : i32, i32
  }
  func.func @transform_3(%arg0: i32) -> (i32, i32) {
    %c0_i32 = arith.constant 0 : i32
    %c0_i32_0 = arith.constant 0 : i32
    return %arg0, %c0_i32 : i32, i32
  }
}

module attributes {stable_mosaic.version = 11 : i64} {
  func.func @_rope_table_kernel(%arg0: i32, %arg1: memref<2x256xf32, #tpu.memory_space<vmem>>, %arg2: memref<2x256xbf16, #tpu.memory_space<vmem>>, %arg3: memref<2x256xbf16, #tpu.memory_space<vmem>>, %arg4: memref<2x256xf32, #tpu.memory_space<vmem>>) attributes {dimension_semantics = [#tpu.dimension_semantics<parallel>], iteration_bounds = array<i64: 1>, scalar_prefetch = 0 : i64, scratch_operands = 0 : i64, tpu.core_type = #tpu.core_type<tc>, window_params = [{transform_indices = @transform_0, window_bounds = array<i64: 2, 256>}, {transform_indices = @transform_1, window_bounds = array<i64: 2, 256>}, {transform_indices = @transform_2, window_bounds = array<i64: 2, 256>}, {transform_indices = @transform_3, window_bounds = array<i64: 2, 256>}]} {
    %c0 = arith.constant 0 : index
    %c0_0 = arith.constant 0 : index
    %0 = vector.load %arg1[%c0, %c0_0] : memref<2x256xf32, #tpu.memory_space<vmem>>, vector<2x256xf32>
    %c0_1 = arith.constant 0 : index
    %c0_2 = arith.constant 0 : index
    %1 = vector.load %arg2[%c0_1, %c0_2] : memref<2x256xbf16, #tpu.memory_space<vmem>>, vector<2x256xbf16>
    %2 = arith.extf %1 : vector<2x256xbf16> to vector<2x256xf32>
    %c0_3 = arith.constant 0 : index
    %c0_4 = arith.constant 0 : index
    %3 = vector.load %arg3[%c0_3, %c0_4] : memref<2x256xbf16, #tpu.memory_space<vmem>>, vector<2x256xbf16>
    %4 = arith.extf %3 : vector<2x256xbf16> to vector<2x256xf32>
    %5 = arith.mulf %2, %0 : vector<2x256xf32>
    %c255_i32 = arith.constant 255 : i32
    %6 = tpu.dynamic_rotate %0 by %c255_i32 dim 1 : vector<2x256xf32>, i32 -> vector<2x256xf32>
    %c1_i32 = arith.constant 1 : i32
    %7 = tpu.dynamic_rotate %0 by %c1_i32 dim 1 : vector<2x256xf32>, i32 -> vector<2x256xf32>
    %8 = tpu.iota {dimensions = array<i32: 1>} : vector<2x256xi32>
    %c2_i32 = arith.constant 2 : i32
    %c0_i32 = arith.constant 0 : i32
    %9 = arith.cmpi eq, %c2_i32, %c0_i32 : i32
    %c1_i32_5 = arith.constant 1 : i32
    %10 = arith.select %9, %c1_i32_5, %c2_i32 : i32
    %11 = vector.broadcast %10 : i32 to vector<2x256xi32>
    %12 = arith.remsi %8, %11 : vector<2x256xi32>
    %c0_i32_6 = arith.constant 0 : i32
    %13 = vector.broadcast %c0_i32_6 : i32 to vector<2x256xi32>
    %14 = arith.cmpi ne, %12, %13 : vector<2x256xi32>
    %c0_i32_7 = arith.constant 0 : i32
    %15 = vector.broadcast %c0_i32_7 : i32 to vector<2x256xi32>
    %16 = arith.cmpi slt, %12, %15 : vector<2x256xi32>
    %c0_i32_8 = arith.constant 0 : i32
    %17 = arith.cmpi slt, %10, %c0_i32_8 : i32
    %18 = vector.broadcast %17 : i1 to vector<2x256xi1>
    %19 = vector.broadcast %18 : vector<2x256xi1> to vector<2x256xi1>
    %20 = arith.xori %16, %19 : vector<2x256xi1>
    %21 = arith.andi %20, %14 : vector<2x256xi1>
    %22 = vector.broadcast %10 : i32 to vector<2x256xi32>
    %23 = arith.addi %12, %22 : vector<2x256xi32>
    %24 = arith.select %21, %23, %12 : vector<2x256xi1>, vector<2x256xi32>
    %c0_i32_9 = arith.constant 0 : i32
    %25 = vector.broadcast %c0_i32_9 : i32 to vector<2x256xi32>
    %26 = arith.cmpi eq, %24, %25 : vector<2x256xi32>
    %27 = arith.select %26, %6, %7 : vector<2x256xi1>, vector<2x256xf32>
    %28 = arith.mulf %4, %27 : vector<2x256xf32>
    %29 = arith.addf %5, %28 : vector<2x256xf32>
    %c0_10 = arith.constant 0 : index
    %c0_11 = arith.constant 0 : index
    %30 = vector.load %arg4[%c0_10, %c0_11] : memref<2x256xf32, #tpu.memory_space<vmem>>, vector<2x256xf32>
    tpu.vector_store %arg4[%c0_10, %c0_11], %29 {strides = array<i32>} : memref<2x256xf32, #tpu.memory_space<vmem>>, vector<2x256xf32>,
    return
  }
  func.func @transform_0(%arg0: i32) -> (i32, i32) {
    %c0_i32 = arith.constant 0 : i32
    %c0_i32_0 = arith.constant 0 : i32
    return %arg0, %c0_i32 : i32, i32
  }
  func.func @transform_1(%arg0: i32) -> (i32, i32) {
    %c0_i32 = arith.constant 0 : i32
    %c0_i32_0 = arith.constant 0 : i32
    return %arg0, %c0_i32 : i32, i32
  }
  func.func @transform_2(%arg0: i32) -> (i32, i32) {
    %c0_i32 = arith.constant 0 : i32
    %c0_i32_0 = arith.constant 0 : i32
    return %arg0, %c0_i32 : i32, i32
  }
  func.func @transform_3(%arg0: i32) -> (i32, i32) {
    %c0_i32 = arith.constant 0 : i32
    %c0_i32_0 = arith.constant 0 : i32
    return %arg0, %c0_i32 : i32, i32
  }
}

</mosaic_0001>

<bundles_post_ra>
// kernel: tpu_custom_call.1
= control target key start
LH: loop header
LB: loop body
LE: loop exit
PB: predicated region body
PF: predicated region fallthrough
CT: control target
= control target key end

     0   :  { %s591_s16 = smov 32   ;;  %v592_v2 = vmov 0   ;;  %s793_s0 = inlined_call_operand.vmem [shape: f32[16,1], index: 0, kind: input, shape index: {}]   ;;  %s794_s1 = inlined_call_operand.vmem [shape: f32[16,32], index: 1, kind: input, shape index: {}]   ;;  %s795_s2 = inlined_call_operand.vmem [shape: f32[1,32], index: 2, kind: input, shape index: {}]   ;;  %s796_s3 = inlined_call_operand.hbm [shape: f32[16,32], index: 3, kind: output, shape index: {}]  }
   0x1   :  { %v627_v0 = vld [vmem:[%s794_s1] sm:$0xff]  ;;  %559 = vset.pattern.permute.xlu1 %v592_v2  ;;  %v636_v3 = vld [vmem:[%s794_s1 + $0x8] sm:$0xff]  ;;  %560 = vset.pattern.permute.xlu0 %v592_v2 }
   0x2   :  { %v17_v1 = vld [vmem:[%s793_s0] sm:$0xff]  ;;  %455 = vrot.lane.b32.xlu0 %v627_v0, %s591_s16  ;;  %v18_v4 = vld [vmem:[%s793_s0 + $0x8] sm:$0xff] }
   0x3   :  { %22 = vperm.xlu1 %559, %v17_v1  }
   0x4   :  { %8 = vsyncpa [#allocation3], 0  ;;  %vm454_vm0 = vcmask 1047808   ;;  %v521_v10 = vld [vmem:[%s795_s2] ss:$0 sm:$0xff]  ;;  %s599_s0 = smov 127  }
   0x5   :  { %v593_v29 = vmov 683565275   ;;  %v594_v32 = vmov 2475754826   ;;  %v595_v34 = vmov 2102212464  }
   0x6   :  { %458 = vrot.lane.b32.xlu0 %v636_v3, %s591_s16  ;;  %v596_v36 = vmov 920167782   ;;  %v597_v40 = vmov 1326507024   ;;  %v598_v43 = vmov 2131351028  }
   0x7   :  { %27 = vperm.xlu1 %559, %v18_v4   ;;  %s600_s2 = smov 97   ;;  %s601_s22 = smov [#allocation2]  }
   0x8   :  { %s510_s23 = sshll.u32 %s601_s22, 4  ;;  %s511_s23 = int_to_ptr.vmem [resolvable:$true] %s510_s23 }
   0x9   :  { %s569_s24 = scalar_lea.vmem %s511_s23, 256  ;;  %p574_p1 = scmp.lt.s32.totalorder %s511_s23, %s511_s23 }
   0xa   :  { %p570_p0 = scmp.ne.s32.totalorder %s511_s23, %s569_s24  ;;  %p575_p2 = scmp.lt.s32.totalorder %s569_s24, %s569_s24 }
   0xc   :  { %p576_p3 = por %p575_p2, %p574_p1 }
   0xe   :  { %p577_p4 = pnand %p576_p3, %p570_p0 }
  0x74   :  { %v456_v5 = vpop.permute.xlu0 %455 }
  0x75   :  { %v457_v6 = vsel %vm454_vm0, %v456_v5, %v627_v0 }
  0x76   :  { %461 = vrot.lane.b32.xlu0 %v457_v6, %s591_s16 }
  0x78   :  { %v459_v7 = vpop.permute.xlu0 %458 }
  0x79   :  { %v460_v8 = vsel %vm454_vm0, %v459_v7, %v636_v3 }
  0x7a   :  { %463 = vrot.lane.b32.xlu1 %v460_v8, %s591_s16 }
  0x7e   :  { %v23_v9 = vpop.permute.xlu1 %22 }
  0x7f   :  { %v649_v11 = vmul.f32 %v521_v10, %v23_v9 }
  0x81   :  { %v41_v13 = vand.u32 2139095040, %v649_v11  ;;  %v38_v27 = vand.u32 2147483647, %v649_v11  ;;  %vm40_vm15 = vcmp.lt.s32.totalorder %v649_v11, 0 }
  0x82   :  { %v28_v12 = vpop.permute.xlu1 %27 }
  0x83   :  { %v652_v14 = vmul.f32 %v521_v10, %v28_v12  ;;  %v42_v15 = vshrl.u32 %v41_v13, 23  ;;  %v45_v47 = vand.u32 8388607, %v38_v27 }
  0x85   :  { %v144_v16 = vand.u32 2139095040, %v652_v14  ;;  %v522_v17 = vadd.s32 4294967169, %v42_v15  ;;  %v141_v31 = vand.u32 2147483647, %v652_v14  ;;  %v46_v5 = vor.u32 8388608, %v45_v47 }
  0x87   :  { %v145_v18 = vshrl.u32 %v144_v16, 23  ;;  %v48_v19 = vadd.s32 1, %v522_v17  ;;  %v148_v48 = vand.u32 8388607, %v141_v31 }
  0x89   :  { %v526_v20 = vadd.s32 4294967169, %v145_v18  ;;  %vm49_vm1 = vcmp.gt.s32.totalorder %v48_v19, 0  ;;  %v149_v10 = vor.u32 8388608, %v148_v48 }
  0x8a   :  { %v50_v22 = vsel %vm49_vm1, %v48_v19, 0  ;;  %v86_v19 = vshll.u32 %v46_v5, 8  ;;  %vm143_vm1 = vcmp.lt.s32.totalorder %v652_v14, 0 }
  0x8b   :  { %v151_v21 = vadd.s32 1, %v526_v20  ;;  %v52_v23 = vand.u32 31, %v50_v22  ;;  %v658_v28 = vshrl.u32 %v50_v22, 5 }
  0x8d   :  { %vm152_vm2 = vcmp.gt.s32.totalorder %v151_v21, 0  ;;  %v655_v25 = vsub.s32 32, %v52_v23  ;;  %v55_v30 = vshll.u32 %v593_v29, %v52_v23  ;;  %v64_v35 = vshll.u32 %v595_v34, %v52_v23 }
  0x8e   :  { %v153_v24 = vsel %vm152_vm2, %v151_v21, 0  ;;  %v67_v39 = vshll.u32 %v596_v36, %v52_v23  ;;  %v58_v42 = vshll.u32 %v594_v32, %v52_v23  ;;  %v61_v45 = vshll.u32 %v598_v43, %v52_v23 }
  0x8f   :  { %v155_v26 = vand.u32 31, %v153_v24  ;;  %v56_v33 = vshrl.u32 %v594_v32, %v655_v25  ;;  %v65_v37 = vshrl.u32 %v596_v36, %v655_v25  ;;  %v68_v41 = vshrl.u32 %v597_v40, %v655_v25 }
  0x90   :  { %v59_v44 = vshrl.u32 %v598_v43, %v655_v25  ;;  %v62_v46 = vshrl.u32 %v595_v34, %v655_v25  ;;  %vm70_vm3 = vcmp.lt.s32.totalorder %v658_v28, 1  ;;  %vm73_vm4 = vcmp.lt.s32.totalorder %v658_v28, 4 }
  0x91   :  { %v664_v38 = vsub.s32 32, %v155_v26  ;;  %v57_v49 = vor.u32 %v56_v33, %v55_v30  ;;  %v66_v50 = vor.u32 %v65_v37, %v64_v35  ;;  %v167_v51 = vshll.u32 %v595_v34, %v155_v26 }
  0x92   :  { %v69_v53 = vor.u32 %v68_v41, %v67_v39  ;;  %v676_v54 = vshrl.u32 %v153_v24, 5  ;;  %v170_v55 = vshll.u32 %v596_v36, %v155_v26  ;;  %v60_v57 = vor.u32 %v59_v44, %v58_v42 }
  0x93   :  { %v168_v52 = vshrl.u32 %v596_v36, %v664_v38  ;;  %v171_v56 = vshrl.u32 %v597_v40, %v664_v38  ;;  %v63_v58 = vor.u32 %v62_v46, %v61_v45  ;;  %v158_v59 = vshll.u32 %v593_v29, %v155_v26 }
  0x94   :  { %v161_v60 = vshll.u32 %v594_v32, %v155_v26  ;;  %v159_v61 = vshrl.u32 %v594_v32, %v664_v38  ;;  %v162_v62 = vshrl.u32 %v598_v43, %v664_v38  ;;  %v164_v63 = vshll.u32 %v598_v43, %v155_v26 }
  0x95   :  { %v165_v1 = vshrl.u32 %v595_v34, %v664_v38  ;;  %vm72_vm5 = vcmp.lt.s32.totalorder %v658_v28, 3  ;;  %v79_v2 = vsel %vm73_vm4, %v66_v50, 920167782  ;;  %v169_v4 = vor.u32 %v168_v52, %v167_v51 }
  0x96   :  { %v83_v6 = vsel %vm73_vm4, %v69_v53, 1326507024  ;;  %v172_v7 = vor.u32 %v171_v56, %v170_v55  ;;  %vm176_vm6 = vcmp.lt.s32.totalorder %v676_v54, 4  ;;  %vm71_vm7 = vcmp.lt.s32.totalorder %v658_v28, 2 }
  0x97   :  { %v78_v8 = vsel %vm70_vm3, %v57_v49, %v60_v57  ;;  %v82_v9 = vsel %vm70_vm3, %v60_v57, %v63_v58  ;;  %v80_v12 = vsel %vm72_vm5, %v63_v58, %v79_v2  ;;  %v160_v13 = vor.u32 %v159_v61, %v158_v59 }
  0x98   :  { %v163_v15 = vor.u32 %v162_v62, %v161_v60  ;;  %v166_v16 = vor.u32 %v165_v1, %v164_v63  ;;  %v84_v17 = vsel %vm72_vm5, %v66_v50, %v83_v6  ;;  %vm173_vm8 = vcmp.lt.s32.totalorder %v676_v54, 1 }
  0x99   :  { %vm175_vm9 = vcmp.lt.s32.totalorder %v676_v54, 3  ;;  %v182_v18 = vsel %vm176_vm6, %v169_v4, 920167782  ;;  %v186_v20 = vsel %vm176_vm6, %v172_v7, 1326507024  ;;  %v81_v21 = vsel %vm71_vm7, %v78_v8, %v80_v12 }
  0x9a   :  { %v85_v22 = vsel %vm71_vm7, %v82_v9, %v84_v17  ;;  %vm174_vm10 = vcmp.lt.s32.totalorder %v676_v54, 2  ;;  %v181_v23 = vsel %vm173_vm8, %v160_v13, %v163_v15  ;;  %v183_v24 = vsel %vm175_vm9, %v166_v16, %v182_v18 }
  0x9b   :  { %v185_v26 = vsel %vm173_vm8, %v163_v15, %v166_v16  ;;  %v187_v30 = vsel %vm175_vm9, %v169_v4, %v186_v20  ;;  %v189_v32 = vshll.u32 %v149_v10, 8  ;;  %v54_v34 = vshrl.u32 %v593_v29, %v655_v25 }
  0x9c   :  { %v719_v35 = vmul.u32.u64.low %v86_v19, %v81_v21  ;;  %v720_v36 = vmul.u32.u64.high %v86_v19, %v81_v21, %v719_v35  ;;  %v724_v39 = vmul.u32.u64.low %v86_v19, %v85_v22  ;;  %v725_v40 = vmul.u32.u64.high %v86_v19, %v85_v22, %v724_v39 }
  0x9d   :  { %v184_v41 = vsel %vm174_vm10, %v181_v23, %v183_v24  ;;  %v75_v42 = vsel %vm73_vm4, %v63_v58, 2102212464  ;;  %v188_v25 = vsel %vm174_vm10, %v185_v26, %v187_v30  ;;  %v74_v44 = vsel %vm70_vm3, %v54_v34, %v57_v49 }
  0x9e   :  { %v735_v45 = vmul.u32.u64.low %v189_v32, %v184_v41  ;;  %v736_v46 = vmul.u32.u64.high %v189_v32, %v184_v41, %v735_v45  ;;  %v76_v48 = vsel %vm72_vm5, %v60_v57, %v75_v42  ;;  %v157_v50 = vshrl.u32 %v593_v29, %v664_v38 }
  0x9f   :  { %v744_v51 = vmul.u32.u64.low %v189_v32, %v188_v25  ;;  %v745_v52 = vmul.u32.u64.high %v189_v32, %v188_v25, %v744_v51  ;;  %v178_v49 = vsel %vm176_vm6, %v166_v16, 2102212464  ;;  %v77_v53 = vsel %vm71_vm7, %v74_v44, %v76_v48 }
  0xa0   :  { %v96_v55 = vadd.s32 1, %v720_v36  ;;  %vm95_vm11 = vc.u32 %v725_v40, %v719_v35  ;;  %v177_v56 = vsel %vm173_vm8, %v157_v50, %v160_v13  ;;  %v179_v29 = vsel %vm175_vm9, %v163_v15, %v178_v49 }
  0xa1   :  { %v93_v38 = vmul.u32 %v86_v19, %v77_v53  ;;  %v180_v58 = vsel %vm174_vm10, %v177_v56, %v179_v29  ;;  %v199_v28 = vadd.s32 1, %v736_v46  ;;  %vm198_vm12 = vc.u32 %v745_v52, %v735_v45 }
  0xa2   :  { %v97_v57 = vsel %vm95_vm11, %v96_v55, %v720_v36  ;;  %v196_v60 = vmul.u32 %v189_v32, %v180_v58  ;;  %v94_v21 = vadd.s32 %v719_v35, %v725_v40  ;;  %vm142_vm2 = vcmp.le.f32.partialorder %v141_v31, 0.7853982 }
  0xa3   :  { %v98_v59 = vadd.s32 %v97_v57, %v93_v38  ;;  %v200_v61 = vsel %vm198_vm12, %v199_v28, %v736_v46  ;;  %vm130_vm11 = vweird.f32 %v649_v11 }
  0xa4   :  { %v201_v63 = vadd.s32 %v200_v61, %v196_v60 }
  0xa5   :  { %v99_v62 = vadd.s32 536870912, %v98_v59 }
  0xa6   :  { %v202_v2 = vadd.s32 536870912, %v201_v63 }
  0xa7   :  { %v100_v1 = vshrl.u32 %v99_v62, 30  ;;  %v467_v62 = vlaneseq }
  0xa8   :  { %v203_v5 = vshrl.u32 %v202_v2, 30 }
  0xa9   :  { %v101_v4 = vshll.u32 %v100_v1, 30  ;;  %v124_v56 = vsub.s32 4, %v100_v1 }
  0xaa   :  { %v204_v7 = vshll.u32 %v203_v5, 30  ;;  %v227_v38 = vsub.s32 4, %v203_v5 }
  0xab   :  { %v102_v6 = vsub.s32 %v98_v59, %v101_v4  ;;  %v125_v29 = vsel %vm40_vm15, %v124_v56, %v100_v1 }
  0xac   :  { %v205_v9 = vsub.s32 %v201_v63, %v204_v7  ;;  %v228_v57 = vsel %vm143_vm1, %v227_v38, %v203_v5 }
  0xad   :  { %v104_v8 = vsub.s32 0, %v102_v6  ;;  %v230_v59 = vsel %vm142_vm2, 0, %v228_v57 }
  0xae   :  { %v207_v10 = vsub.s32 0, %v205_v9  ;;  %v443_v31 = vadd.s32 3, %v230_v59 }
  0xaf   :  { %v523_v54 = vmin.u32 %v104_v8, %v102_v6  ;;  %v468_v8 = vand.u32 127, %v467_v62 }
  0xb0   :  { %v527_v13 = vmin.u32 %v207_v10, %v205_v9  ;;  %v444_v1 = vand.u32 3, %v443_v31 }
  0xb1   :  { %v106_v12 = vclz %v523_v54 }
  0xb2   :  { %v209_v16 = vclz %v527_v13  ;;  %v473_v13 = vand.u32 1, %v468_v8  ;;  %vm446_vm12 = vcmp.eq.s32.totalorder %v444_v1, 0 }
  0xb3   :  { %v524_v15 = vadd.s32 4294967294, %v106_v12 }
  0xb4   :  { %v528_v17 = vadd.s32 4294967294, %v209_v16 }
  0xb5   :  { %vm525_vm13 = vcmp.lt.s32.totalorder %v524_v15, 0 }
  0xb6   :  { %v109_v18 = vsel %vm525_vm13, 0, %v524_v15  ;;  %vm529_vm14 = vcmp.lt.s32.totalorder %v528_v17, 0  ;;  %vm449_vm13 = vcmp.eq.s32.totalorder %v444_v1, 2 }
  0xb7   :  { %v114_v19 = vsub.s32 4294967266, %v109_v18  ;;  %v212_v20 = vsel %vm529_vm14, 0, %v528_v17  ;;  %v110_v22 = vsub.s32 32, %v109_v18  ;;  %v111_v26 = vshll.u32 %v102_v6, %v109_v18 }
  0xb8   :  { %v217_v24 = vsub.s32 4294967266, %v212_v20  ;;  %v213_v34 = vsub.s32 32, %v212_v20  ;;  %v214_v41 = vshll.u32 %v205_v9, %v212_v20  ;;  %v234_v9 = vand.u32 3, %v230_v59 }
  0xb9   :  { %v115_v23 = vadd.s32 127, %v114_v19  ;;  %v112_v30 = vshrl.u32 %v94_v21, %v110_v22 }
  0xba   :  { %v218_v36 = vadd.s32 127, %v217_v24  ;;  %vm236_vm8 = vcmp.eq.s32.totalorder %v234_v9, 0  ;;  %vm239_vm9 = vcmp.eq.s32.totalorder %v234_v9, 2  ;;  %vm235_vm14 = vcmp.lt.s32.totalorder %v234_v9, 2 }
  0xbb   :  { %v116_v32 = vshll.u32 %v115_v23, 23 }
  0xbc   :  { %v219_v25 = vshll.u32 %v218_v36, 23 }
  0xbd   :  { %v117_v39 = vor.u32 4788187, %v116_v32 }
  0xe8   :  { %v462_v33 = vpop.permute.xlu0 %461 }
  0xe9   :  { %v465_v37 = vsel %vm454_vm0, %v462_v33, %v627_v0  ;;  %v197_v33 = vadd.s32 %v735_v45, %v745_v52 }
  0xea   :  { %484 = vrot.lane.b32.xlu0 %v465_v37, %s599_s0 }
  0xeb   :  { %v215_v42 = vshrl.u32 %v197_v33, %v213_v34 }
  0xec   :  { %v464_v43 = vpop.permute.xlu1 %463 }
  0xed   :  { %v466_v47 = vsel %vm454_vm0, %v464_v43, %v636_v3  ;;  %v118_v43 = vand.u32 2147483647, %v117_v39  ;;  %v216_v46 = vor.u32 %v215_v42, %v214_v41  ;;  %vm39_vm0 = vcmp.le.f32.partialorder %v38_v27, 0.7853982 }
  0xee   :  { %486 = vrot.lane.b32.xlu1 %v466_v47, %s599_s0  ;;  %490 = vrot.lane.b32.xlu0 %v465_v37, %s600_s2  ;;  %v113_v37 = vor.u32 %v112_v30, %v111_v26  ;;  %v127_v27 = vsel %vm39_vm0, 0, %v125_v29 }
  0xef   :  { %v223_v48 = vcvt.s32.f32 %v216_v46  ;;  %v339_v58 = vadd.s32 3, %v127_v27  ;;  %v131_v61 = vand.u32 3, %v127_v27 }
  0xf0   :  { %v120_v44 = vcvt.s32.f32 %v113_v37 }
  0xf1   :  { %v340_v63 = vand.u32 3, %v339_v58  ;;  %vm133_vm3 = vcmp.eq.s32.totalorder %v131_v61, 0  ;;  %vm136_vm4 = vcmp.eq.s32.totalorder %v131_v61, 2  ;;  %vm132_vm5 = vcmp.lt.s32.totalorder %v131_v61, 2 }
  0xf2   :  { %492 = vrot.lane.b32.xlu1 %v466_v47, %s600_s2  ;;  %v220_v47 = vor.u32 4788187, %v219_v25  ;;  %v121_v35 = vmul.f32 %v120_v44, %v118_v43 }
  0xf3   :  { %vm342_vm6 = vcmp.eq.s32.totalorder %v340_v63, 0  ;;  %vm345_vm7 = vcmp.eq.s32.totalorder %v340_v63, 2  ;;  %vm341_vm10 = vcmp.lt.s32.totalorder %v340_v63, 2 }
  0xf4   :  { %v221_v40 = vand.u32 2147483647, %v220_v47  ;;  %v122_v50 = vxor.u32 2147483648, %v121_v35 }
  0xf6   :  { %v224_v51 = vmul.f32 %v223_v48, %v221_v40  ;;  %v123_v45 = vsel %vm40_vm15, %v122_v50, %v121_v35  ;;  %vm775_vm15 = vcmp.eq.s32.totalorder %v473_v13, 0 }
  0xf7   :  { %v126_v49 = vsel %vm39_vm0, %v649_v11, %v123_v45  ;;  %vm445_vm0 = vcmp.lt.s32.totalorder %v444_v1, 2 }
  0xf8   :  { %v225_v52 = vxor.u32 2147483648, %v224_v51  ;;  %561 = vcosq.f32 %v126_v49 }
  0xf9   :  { %563 = vsinq.f32 %v126_v49 }
  0xfa   :  { %v226_v53 = vsel %vm143_vm1, %v225_v52, %v224_v51  ;;  %vm233_vm1 = vweird.f32 %v652_v14 }
  0xfb   :  { %v229_v55 = vsel %vm142_vm2, %v652_v14, %v226_v53  ;;  %vm502_vm2 = vcmask 261120  }
  0xfc   :  { %565 = vcosq.f32 %v229_v55 }
  0xfd   :  { %567 = vsinq.f32 %v229_v55 }
 0x105   :  { %v562_v28 = vpop.eup %561 }
 0x106   :  { %v564_v60 = vpop.eup %563  ;;  %v137_v6 = vxor.u32 2147483648, %v562_v28 }
 0x107   :  { %v134_v4 = vxor.u32 2147483648, %v564_v60 }
 0x108   :  { %v138_v54 = vsel %vm136_vm4, %v137_v6, %v564_v60  ;;  %v347_v16 = vsel %vm345_vm7, %v137_v6, %v564_v60 }
 0x109   :  { %v566_v2 = vpop.eup %565  ;;  %v135_v5 = vsel %vm133_vm3, %v562_v28, %v134_v4  ;;  %v344_v15 = vsel %vm342_vm6, %v562_v28, %v134_v4 }
 0x10a   :  { %v568_v7 = vpop.eup %567  ;;  %v240_v12 = vxor.u32 2147483648, %v566_v2  ;;  %v139_v18 = vsel %vm132_vm5, %v135_v5, %v138_v54  ;;  %v348_v21 = vsel %vm341_vm10, %v344_v15, %v347_v16 }
 0x10b   :  { %v237_v10 = vxor.u32 2147483648, %v568_v7  ;;  %v140_v23 = vsel %vm130_vm11, nan, %v139_v18  ;;  %v349_v34 = vsel %vm130_vm11, nan, %v348_v21 }
 0x10c   :  { %v241_v20 = vsel %vm239_vm9, %v240_v12, %v568_v7  ;;  %v451_v26 = vsel %vm449_vm13, %v240_v12, %v568_v7  ;;  %v244_v37 = vmul.f32 %v140_v23, %v627_v0 }
 0x10d   :  { %v238_v19 = vsel %vm236_vm8, %v566_v2, %v237_v10  ;;  %v448_v24 = vsel %vm446_vm12, %v566_v2, %v237_v10 }
 0x10e   :  { %v242_v33 = vsel %vm235_vm14, %v238_v19, %v241_v20  ;;  %v452_v41 = vsel %vm445_vm0, %v448_v24, %v451_v26 }
 0x10f   :  { %v243_v42 = vsel %vm233_vm1, nan, %v242_v33  ;;  %v453_v44 = vsel %vm233_vm1, nan, %v452_v41 }
 0x110   :  { %v245_v11 = vmul.f32 %v243_v42, %v636_v3 }
 0x15c   :  { %v485_v17 = vpop.permute.xlu0 %484 }
 0x160   :  { %v487_v30 = vpop.permute.xlu1 %486  ;;  %v491_v32 = vpop.permute.xlu0 %490 }
 0x161   :  { %v496_v36 = vsel %vm775_vm15, %v485_v17, %v491_v32 }
 0x162   :  { %v498_v39 = vmul.f32 %v496_v36, %v349_v34 }
 0x164   :  { %v500_v25 = vadd.f32 %v498_v39, %v244_v37  ;;  %v493_v43 = vpop.permute.xlu1 %492 }
 0x165   :  { %v497_v14 = vsel %vm775_vm15, %v487_v30, %v493_v43 }
 0x166   :  { %503 = vst.msk [vmem:[#allocation2] sm:$0xff] %vm502_vm2, %v500_v25  ;;  %v499_v46 = vmul.f32 %v497_v14, %v453_v44 }
 0x168   :  { %v501_v47 = vadd.f32 %v499_v46, %v245_v11 }
 0x16a   :  { %504 = vst.msk [vmem:[#allocation2 + $0x8] sm:$0xff] %vm502_vm2, %v501_v47 }
 0x16b   :  { %580 = shalt.err (!%p577_p4)
}
 0x16c   :  { %s602_s25 = smov 128   ;;  %s603_s26 = smov 8  }
 0x16d   :  { %516 = dma.vmem_to_hbm [thread:$0]  %s511_s23, 256, %s796_s3, [#allocation3], %s602_s25, %s602_s25, %s603_s26  }
 0x16e   :  { %589 = dma.done.wait [#allocation3], 256  }
 0x16f   :  { %590 = vsyncadd [#allocation3], 4294967040 }
 0x170   :  { %520 = vsyncpa [#allocation3], 1 }

// kernel: tpu_custom_call.1
= control target key start
LH: loop header
LB: loop body
LE: loop exit
PB: predicated region body
PF: predicated region fallthrough
CT: control target
= control target key end

     0   :  { %8 = vsyncpa [#allocation3], 0  ;;  %s241_s0 = inlined_call_operand.hbm [shape: f32[2,256], index: 0, kind: input, shape index: {}]   ;;  %s242_s1 = inlined_call_operand.hbm [shape: bf16[2,256], index: 1, kind: input, shape index: {}]   ;;  %s243_s2 = inlined_call_operand.vmem [shape: bf16[2,256], index: 2, kind: input, shape index: {}]   ;;  %s244_s3 = inlined_call_operand.hbm [shape: f32[2,256], index: 3, kind: output, shape index: {}]  }
   0x1   :  { %9 = vsyncpa [#allocation6], 0 }
   0x2   :  { %10 = vsyncpa [#allocation4], 0  ;;  %s203_s12 = smov [#allocation2]   ;;  %s204_s14 = smov [#allocation5]  }
   0x3   :  { %s17_s13 = sshll.u32 %s203_s12, 4  ;;  %s27_s15 = sshll.u32 %s204_s14, 4  ;;  %s18_s13 = int_to_ptr.vmem [resolvable:$true] %s17_s13  ;;  %s28_s15 = int_to_ptr.vmem [resolvable:$true] %s27_s15 }
   0x4   :  { %s145_s16 = scalar_lea.vmem %s18_s13, 64  ;;  %p150_p1 = scmp.lt.s32.totalorder %s18_s13, %s18_s13 }
   0x5   :  { %p146_p0 = scmp.ne.s32.totalorder %s18_s13, %s145_s16  ;;  %p151_p2 = scmp.lt.s32.totalorder %s145_s16, %s145_s16 }
   0x7   :  { %p152_p3 = por %p151_p2, %p150_p1 }
   0x9   :  { %p153_p4 = pnand %p152_p3, %p146_p0 }
   0xb   :  { %156 = shalt.err (!%p153_p4)
}
   0xc   :  { %20 = dma.hbm_to_vmem [thread:$0]  %s241_s0, 64, %s18_s13, [#allocation3]  }
   0xd   :  { %s165_s19 = scalar_lea.vmem %s28_s15, 32  ;;  %p170_p6 = scmp.lt.s32.totalorder %s28_s15, %s28_s15 }
   0xe   :  { %p166_p5 = scmp.ne.s32.totalorder %s28_s15, %s165_s19  ;;  %p171_p7 = scmp.lt.s32.totalorder %s165_s19, %s165_s19 }
  0x10   :  { %p172_p8 = por %p171_p7, %p170_p6 }
  0x12   :  { %p173_p9 = pnand %p172_p8, %p166_p5 }
  0x14   :  { %176 = shalt.err (!%p173_p9)
}
  0x15   :  { %30 = dma.hbm_to_vmem [thread:$0]  %s242_s1, 32, %s28_s15, [#allocation6]  }
  0x16   :  { %197 = dma.done.wait [#allocation3], 64  }
  0x17   :  { %198 = vsyncadd [#allocation3], 4294967232 }
  0x18   :  { %199 = dma.done.wait [#allocation6], 32  }
  0x19   :  { %200 = vsyncadd [#allocation6], 4294967264  ;;  %v49_v0 = vlaneseq  ;;  %v205_v1 = vmov 1983009808   ;;  %v39_v6 = vld [vmem:[#allocation2] sm:$0xf] }
  0x1a   :  { %v47_v2 = vunpack.c.l.s4 %v205_v1  ;;  %s206_s0 = smov 1   ;;  %s207_s22 = smov 127   ;;  %v40_v15 = vld [vmem:[#allocation5] sm:$0x3]  ;;  %v42_v19 = vld [vmem:[%s243_s2] sm:$0x3] }
  0x1b   :  { %v50_v3 = vshrl.u32 %v49_v0, 7  ;;  %v61_v9 = vand.u32 127, %v49_v0  ;;  %v41_v18 = vunpack.c.l.bf16 %v40_v15  ;;  %v43_v27 = vunpack.c.l.bf16 %v42_v19  ;;  %s208_s24 = smov [#allocation7]  }
  0x1c   :  { %v48_v4 = vunpack.c.0.s8 %v47_v2  ;;  %s121_s25 = sshll.u32 %s208_s24, 4  ;;  %s122_s25 = int_to_ptr.vmem [resolvable:$true] %s121_s25 }
  0x1d   :  { %v72_v10 = vadd.s32 128, %v61_v9  ;;  %v77_v11 = vand.u32 1, %v61_v9  ;;  %vm69_vm0 = vcmp.lt.s32.totalorder %v61_v9, 1  ;;  %vm62_vm1 = vcmp.lt.s32.totalorder %v61_v9, 127  ;;  %s177_s26 = scalar_lea.vmem %s122_s25, 64  ;;  %p182_p11 = scmp.lt.s32.totalorder %s122_s25, %s122_s25 }
  0x1e   :  { %v51_v5 = vsub.s32 %v48_v4, %v50_v3  ;;  %v44_v29 = vmul.f32 %v41_v18, %v39_v6  ;;  %p178_p10 = scmp.ne.s32.totalorder %s122_s25, %s177_s26  ;;  %p183_p12 = scmp.lt.s32.totalorder %s177_s26, %s177_s26 }
  0x1f   :  { %v84_v12 = vand.u32 1, %v72_v10  ;;  %vm97_vm2 = vcmp.eq.s32.totalorder %v77_v11, 0 }
  0x20   :  { %v52_v7 = vrot.slane %v39_v6, %v51_v5  ;;  %p184_p13 = por %p183_p12, %p182_p11 }
  0x21   :  { %vm98_vm3 = vcmp.eq.s32.totalorder %v84_v12, 0 }
  0x22   :  { %65 = vrot.lane.b32.xlu1 %v52_v7, %s206_s0  ;;  %56 = vrot.lane.b32.xlu0 %v52_v7, %s207_s22  ;;  %v53_v8 = vcombine.high %v52_v7, %v52_v7  ;;  %p185_p0 = pnand %p184_p13, %p178_p10 }
  0x26   :  { %67 = vrot.lane.b32.xlu1 %v53_v8, %s206_s0  ;;  %58 = vrot.lane.b32.xlu0 %v53_v8, %s207_s22 }
  0x94   :  { %v66_v13 = vpop.permute.xlu1 %65  ;;  %v57_v14 = vpop.permute.xlu0 %56 }
  0x98   :  { %v68_v16 = vpop.permute.xlu1 %67  ;;  %v59_v17 = vpop.permute.xlu0 %58 }
  0x99   :  { %v70_v20 = vsel %vm69_vm0, %v66_v13, %v68_v16  ;;  %v71_v21 = vsel %vm69_vm0, %v68_v16, %v66_v13  ;;  %v63_v22 = vsel %vm62_vm1, %v57_v14, %v59_v17  ;;  %v64_v23 = vsel %vm62_vm1, %v59_v17, %v57_v14 }
  0x9a   :  { %v99_v24 = vsel %vm97_vm2, %v63_v22, %v71_v21  ;;  %v100_v25 = vsel %vm98_vm3, %v64_v23, %v70_v20 }
  0x9b   :  { %v103_v26 = vcombine.low %v99_v24, %v100_v25 }
  0x9d   :  { %v110_v28 = vrot.slane %v103_v26, %v51_v5 }
  0x9f   :  { %v112_v30 = vmul.f32 %v110_v28, %v43_v27 }
  0xa1   :  { %v113_v31 = vadd.f32 %v112_v30, %v44_v29 }
  0xa3   :  { %114 = vst [vmem:[#allocation7] sm:$0xf] %v113_v31 }
  0xa4   :  { %188 = shalt.err (!%p185_p0)
}
  0xa5   :  { %124 = dma.vmem_to_hbm [thread:$0]  %s122_s25, 64, %s244_s3, [#allocation4]  }
  0xa6   :  { %201 = dma.done.wait [#allocation4], 64  }
  0xa7   :  { %202 = vsyncadd [#allocation4], 4294967232 }
  0xa8   :  { %128 = vsyncpa [#allocation3], 1 }
  0xa9   :  { %129 = vsyncpa [#allocation6], 1 }
  0xaa   :  { %130 = vsyncpa [#allocation4], 1 }

</bundles_post_ra>
